<compile_context>
chip_gen: v6e
topology: v6e:2x2x1
jax: 0.10.0
libtpu: 0.0.40
codegen_flags: <defaults>
</compile_context>

<pallas_src>
import functools

import jax
import jax.numpy as jnp
from jax.experimental import pallas as pl
from jax.experimental.pallas import tpu as pltpu


def _round_up(x, m):
    return ((x + m - 1) // m) * m


def _choose_tn(D, w_bytes, budget_bytes=16 * (1 << 20)):
    """Pick an output-feature tile TN (multiple of 128, divides D) so that a
    (TN, D) weight tile fits in the VMEM budget.  Falls back to the full D."""
    if D * D * w_bytes <= budget_bytes:
        return D
    n = 2
    while D // n >= 128:
        if D % n == 0:
            tn = D // n
            if tn % 128 == 0 and tn * D * w_bytes <= budget_bytes:
                return tn
        n += 1
    return D


def residual_concat_kernel(x_ref, w_ref, b_ref, o_ref, *, matmul_dtype):
    # x_ref : (TM, D)      input rows (original dtype; also the residual source)
    # w_ref : (TN, D)      torch-layout weight tile (out, in), matmul_dtype
    # b_ref : (1, TN)      bias tile (f32)
    # o_ref : (TM, 2, TN)  output tile: [:, 0, :] = fn(x) cols, [:, 1, :] = x cols
    x = x_ref[...]
    # y[m, o] = sum_i x[m, i] * w[o, i]  ==  x @ W^T  (nn.Linear semantics)
    y = jax.lax.dot_general(
        x.astype(matmul_dtype),
        w_ref[...],
        dimension_numbers=(((1,), (1,)), ((), ())),
        preferred_element_type=jnp.float32,
    )
    y = y + b_ref[...].astype(jnp.float32)
    o_ref[:, 0, :] = y.astype(o_ref.dtype)

    tn = o_ref.shape[2]
    d = x_ref.shape[1]
    if tn == d:
        # single N tile: residual half is the whole input tile
        o_ref[:, 1, :] = x.astype(o_ref.dtype)
    else:
        # N-tiled: residual half is the matching column slice of x
        j = pl.program_id(0)
        col0 = pl.multiple_of(j * tn, 128)
        o_ref[:, 1, :] = x_ref[:, pl.ds(col0, tn)].astype(o_ref.dtype)


def residual_concat_linear(x, w, b, *, matmul_dtype=jnp.bfloat16, tm=256):
    """x: (B, S, D), w: (D, D) torch-style (out, in), b: (D,).

    Returns concat([x @ w.T + b, x], axis=-1) with shape (B, S, 2*D).
    Matmul operands are cast to `matmul_dtype` (bf16, MXU native) with f32
    accumulation; the residual half keeps the input dtype exactly.
    """
    B, S, D = x.shape
    M = B * S
    x2 = x.reshape(M, D)

    x_bytes = x.dtype.itemsize
    w_bytes = jnp.dtype(matmul_dtype).itemsize

    # Row tile: respect sublane packing for the input dtype.
    sub = {4: 8, 2: 16, 1: 32}.get(x_bytes, 8)
    TM = min(_round_up(tm, sub), _round_up(M, sub))
    M_pad = _round_up(M, TM)
    if M_pad != M:
        x2 = jnp.pad(x2, ((0, M_pad - M), (0, 0)))

    # Output-feature tile (usually TN == D: fully resident weight).
    TN = _choose_tn(D, w_bytes)
    n_tiles = D // TN
    m_tiles = M_pad // TM

    wq = w.astype(matmul_dtype)                 # (D, D), contracted on dim 1 in-kernel
    b2 = b.reshape(1, D).astype(jnp.float32)

    # Grid: N-tile outer (weight tile fetched once, resident across rows),
    # row-tile inner (streamed, double-buffered).
    grid = (n_tiles, m_tiles)

    vmem_needed = (2 * TN * D * w_bytes          # weight tile(s)
                   + 2 * TN * 4                  # bias
                   + 2 * TM * D * x_bytes        # x tiles (double-buffered)
                   + 2 * TM * 2 * TN * x_bytes)  # output tiles (double-buffered)
    vmem_limit = int(min(110 * (1 << 20),
                         max(32 * (1 << 20), vmem_needed + (4 << 20))))

    cost = pl.CostEstimate(
        flops=2 * M_pad * D * D,
        transcendentals=0,
        bytes_accessed=(n_tiles * M_pad * D * x_bytes   # x (re-read per N tile)
                        + D * D * w_bytes               # weight
                        + D * 4                         # bias
                        + M_pad * 2 * D * x_bytes),     # output
    )

    kernel = functools.partial(residual_concat_kernel, matmul_dtype=matmul_dtype)

    out = pl.pallas_call(
        kernel,
        out_shape=jax.ShapeDtypeStruct((M_pad, 2, D), x.dtype),
        grid=grid,
        in_specs=[
            pl.BlockSpec((TM, D), lambda j, i: (i, 0)),   # x rows, streamed
            pl.BlockSpec((TN, D), lambda j, i: (j, 0)),   # weight tile, resident over i
            pl.BlockSpec((1, TN), lambda j, i: (0, j)),   # bias tile
        ],
        out_specs=pl.BlockSpec((TM, 2, TN), lambda j, i: (i, 0, j)),
        compiler_params=pltpu.CompilerParams(
            dimension_semantics=("parallel", "parallel"),
            vmem_limit_bytes=vmem_limit,
        ),
        cost_estimate=cost,
    )(x2, wq, b2)

    out = out.reshape(M_pad, 2 * D)[:M]
    return out.reshape(B, S, 2 * D)


if __name__ == "__main__":
    key = jax.random.PRNGKey(0)
    kx, kw, kb = jax.random.split(key, 3)

    B, S, D = 2, 8, 32  # batch, seq, hidden
    x = jax.random.normal(kx, (B, S, D), dtype=jnp.float32)
    # deterministic parameter init for fn = Linear(D, D), torch (out, in) layout
    w = jax.random.normal(kw, (D, D), dtype=jnp.float32) * 0.02
    b = jax.random.normal(kb, (D,), dtype=jnp.float32) * 0.01

    out = residual_concat_linear(x, w, b, matmul_dtype=jnp.bfloat16)
    jax.block_until_ready(out)
    assert out.shape == (B, S, 2 * D)

    # Exact-math reference (same bf16 matmul / f32 accumulation as the kernel).
    x2 = x.reshape(-1, D)
    ref_y = jax.lax.dot_general(
        x2.astype(jnp.bfloat16), w.astype(jnp.bfloat16),
        dimension_numbers=(((1,), (1,)), ((), ())),
        preferred_element_type=jnp.float32,
    ) + b
    ref = jnp.concatenate(
        [ref_y.astype(x.dtype).reshape(B, S, D), x], axis=-1)
    assert jnp.allclose(out, ref, atol=1e-5, rtol=1e-5)

    # Module-level f32 reference (torch semantics), loose tolerance for bf16 MXU path.
    ref_f32 = jnp.concatenate([x @ w.T + b, x], axis=-1)
    assert jnp.allclose(out, ref_f32, atol=2e-2, rtol=2e-2)

    # Residual half must be an exact passthrough of x.
    assert jnp.array_equal(out[..., D:], x)

    print("KERNEL_OK")
</pallas_src>

<mosaic_0001>
module attributes {stable_mosaic.version = 11 : i64} {
  func.func @residual_concat_kernel(%arg0: i32, %arg1: i32, %arg2: memref<16x32xf32, #tpu.memory_space<vmem>>, %arg3: memref<32x32xbf16, #tpu.memory_space<vmem>>, %arg4: memref<1x32xf32, #tpu.memory_space<vmem>>, %arg5: memref<16x2x32xf32, #tpu.memory_space<vmem>>) attributes {dimension_semantics = [#tpu.dimension_semantics<parallel>, #tpu.dimension_semantics<parallel>], iteration_bounds = array<i64: 1, 1>, scalar_prefetch = 0 : i64, scratch_operands = 0 : i64, tpu.core_type = #tpu.core_type<tc>, window_params = [{transform_indices = @transform_0, window_bounds = array<i64: 16, 32>}, {transform_indices = @transform_1, window_bounds = array<i64: 32, 32>}, {transform_indices = @transform_2, window_bounds = array<i64: 1, 32>}, {transform_indices = @transform_3, window_bounds = array<i64: 16, 2, 32>}]} {
    %c0 = arith.constant 0 : index
    %c0_0 = arith.constant 0 : index
    %0 = vector.load %arg2[%c0, %c0_0] : memref<16x32xf32, #tpu.memory_space<vmem>>, vector<16x32xf32>
    %1 = arith.truncf %0 : vector<16x32xf32> to vector<16x32xbf16>
    %c0_1 = arith.constant 0 : index
    %c0_2 = arith.constant 0 : index
    %2 = vector.load %arg3[%c0_1, %c0_2] : memref<32x32xbf16, #tpu.memory_space<vmem>>, vector<32x32xbf16>
    %cst = arith.constant dense<0.000000e+00> : vector<16x32xf32>
    %3 = tpu.matmul %1, %2, %cst {dimension_numbers = #tpu.dot_dimension_numbers<[1], [1], [0], [0], [0, 0, 1, 0], [], []>} : vector<16x32xbf16>, vector<32x32xbf16>, vector<16x32xf32> -> vector<16x32xf32>
    %c0_3 = arith.constant 0 : index
    %c0_4 = arith.constant 0 : index
    %4 = vector.load %arg4[%c0_3, %c0_4] : memref<1x32xf32, #tpu.memory_space<vmem>>, vector<1x32xf32>
    %5 = vector.broadcast %4 : vector<1x32xf32> to vector<16x32xf32>
    %6 = arith.addf %3, %5 : vector<16x32xf32>
    %c0_5 = arith.constant 0 : index
    %c0_6 = arith.constant 0 : index
    %c0_7 = arith.constant 0 : index
    %7 = vector.load %arg5[%c0_5, %c0_6, %c0_7] : memref<16x2x32xf32, #tpu.memory_space<vmem>>, vector<16x1x32xf32>
    %8 = vector.shape_cast %7 : vector<16x1x32xf32> to vector<16x32xf32>
    %9 = vector.shape_cast %6 : vector<16x32xf32> to vector<16x1x32xf32>
    tpu.vector_store %arg5[%c0_5, %c0_6, %c0_7], %9 {strides = array<i32>} : memref<16x2x32xf32, #tpu.memory_space<vmem>>, vector<16x1x32xf32>,
    %c0_8 = arith.constant 0 : index
    %c1 = arith.constant 1 : index
    %c0_9 = arith.constant 0 : index
    %10 = vector.load %arg5[%c0_8, %c1, %c0_9] : memref<16x2x32xf32, #tpu.memory_space<vmem>>, vector<16x1x32xf32>
    %11 = vector.shape_cast %10 : vector<16x1x32xf32> to vector<16x32xf32>
    %12 = vector.shape_cast %0 : vector<16x32xf32> to vector<16x1x32xf32>
    tpu.vector_store %arg5[%c0_8, %c1, %c0_9], %12 {strides = array<i32>} : memref<16x2x32xf32, #tpu.memory_space<vmem>>, vector<16x1x32xf32>,
    return
  }
  func.func @transform_0(%arg0: i32, %arg1: i32) -> (i32, i32) {
    %c0_i32 = arith.constant 0 : i32
    %c0_i32_0 = arith.constant 0 : i32
    return %arg1, %c0_i32 : i32, i32
  }
  func.func @transform_1(%arg0: i32, %arg1: i32) -> (i32, i32) {
    %c0_i32 = arith.constant 0 : i32
    %c0_i32_0 = arith.constant 0 : i32
    return %arg0, %c0_i32 : i32, i32
  }
  func.func @transform_2(%arg0: i32, %arg1: i32) -> (i32, i32) {
    %c0_i32 = arith.constant 0 : i32
    %c0_i32_0 = arith.constant 0 : i32
    return %c0_i32, %arg0 : i32, i32
  }
  func.func @transform_3(%arg0: i32, %arg1: i32) -> (i32, i32, i32) {
    %c0_i32 = arith.constant 0 : i32
    %c0_i32_0 = arith.constant 0 : i32
    return %arg1, %c0_i32, %arg0 : i32, i32, i32
  }
}

</mosaic_0001>

<bundles_post_ra>
// kernel: tpu_custom_call.1
= control target key start
LH: loop header
LB: loop body
LE: loop exit
PB: predicated region body
PF: predicated region fallthrough
CT: control target
= control target key end

     0   :  { %8 = vsyncpa [#allocation3], 0  ;;  %s604_s0 = inlined_call_operand.hbm [shape: f32[16,32], index: 0, kind: input, shape index: {}]   ;;  %s605_s1 = inlined_call_operand.hbm [shape: bf16[32,32], index: 1, kind: input, shape index: {}]   ;;  %s606_s2 = inlined_call_operand.vmem [shape: f32[1,32], index: 2, kind: input, shape index: {}]   ;;  %s607_s3 = inlined_call_operand.hbm [shape: f32[16,2,32], index: 3, kind: output, shape index: {}]  }
   0x1   :  { %9 = vsyncpa [#allocation6], 0 }
   0x2   :  { %10 = vsyncpa [#allocation4], 0  ;;  %s499_s12 = smov [#allocation2]  }
   0x3   :  { %s16_s13 = sshll.u32 %s499_s12, 4  ;;  %s17_s13 = int_to_ptr.vmem [resolvable:$true] %s16_s13 }
   0x4   :  { %s441_s14 = scalar_lea.vmem %s17_s13, 256  ;;  %p446_p1 = scmp.lt.s32.totalorder %s17_s13, %s17_s13 }
   0x5   :  { %p442_p0 = scmp.ne.s32.totalorder %s17_s13, %s441_s14  ;;  %p447_p2 = scmp.lt.s32.totalorder %s441_s14, %s441_s14 }
   0x7   :  { %p448_p3 = por %p447_p2, %p446_p1 }
   0x9   :  { %p449_p4 = pnand %p448_p3, %p442_p0 }
   0xb   :  { %452 = shalt.err (!%p449_p4)
}
   0xc   :  { %s500_s15 = smov 128   ;;  %s501_s16 = smov 8  }
   0xd   :  { %22 = dma.hbm_to_vmem [thread:$0]  %s604_s0, 256, %s17_s13, [#allocation3], %s500_s15, %s500_s15, %s501_s16  }
   0xe   :  { %s502_s19 = smov [#allocation5]  }
   0xf   :  { %s28_s20 = sshll.u32 %s502_s19, 4  ;;  %s29_s20 = int_to_ptr.vmem [resolvable:$true] %s28_s20 }
  0x10   :  { %s461_s21 = scalar_lea.vmem %s29_s20, 256  ;;  %p466_p6 = scmp.lt.s32.totalorder %s29_s20, %s29_s20 }
  0x11   :  { %p462_p5 = scmp.ne.s32.totalorder %s29_s20, %s461_s21  ;;  %p467_p7 = scmp.lt.s32.totalorder %s461_s21, %s461_s21 }
  0x13   :  { %p468_p8 = por %p467_p7, %p466_p6 }
  0x15   :  { %p469_p9 = pnand %p468_p8, %p462_p5 }
  0x17   :  { %472 = shalt.err (!%p469_p9)
}
  0x18   :  { %s503_s22 = smov 64   ;;  %s504_s23 = smov 4  }
  0x19   :  { %34 = dma.hbm_to_vmem [thread:$0]  %s605_s1, 256, %s29_s20, [#allocation6], %s503_s22, %s503_s22, %s504_s23  }
  0x1a   :  { %493 = dma.done.wait [#allocation3], 256  }
  0x1b   :  { %494 = vsyncadd [#allocation3], 4294967040 }
  0x1c   :  { %495 = dma.done.wait [#allocation6], 256  }
  0x1d   :  { %496 = vsyncadd [#allocation6], 4294967040  ;;  %v125_v0 = vlaneseq  ;;  %v505_v1 = vmov 0.0   ;;  %vm506_vm0 = vmmov 0   ;;  %v507_v2 = vmov 1966171168  }
  0x1e   :  { %409 = vmatprep.subr.bf16.mxu0 %v505_v1  ;;  %413 = vmatprep.mubr.msk.bf16.mxu0 %vm506_vm0, %v505_v1  ;;  %v123_v3 = vunpack.c.l.s4 %v507_v2  ;;  %vm68_vm1 = vcmask 261120   ;;  %v429_v6 = vld [vmem:[#allocation5 + $0x8] sm:$0xff]   ;;  %v430_v9 = vld [vmem:[#allocation5] sm:$0xff]   ;;  %v44_v10 = vld [vmem:[#allocation2] sm:$0xff]  ;;  %vm235_vm2 = vcmask 253952  }
  0x1f   :  { %v126_v5 = vshrl.u32 %v125_v0, 7  ;;  %v76_v8 = vsel %vm68_vm1, %v429_v6, 0  ;;  %v45_v11 = vld [vmem:[#allocation2 + $0x8] sm:$0xff]  ;;  %v254_v12 = vcombine.high %v44_v10, %v44_v10  ;;  %v73_v19 = vsel %vm68_vm1, %v430_v9, 0  ;;  %v402_v40 = vld [vmem:[%s606_s2] ss:$0 sm:$0xff] }
  0x20   :  { %v124_v4 = vunpack.c.0.s8 %v123_v3  ;;  %410 = vmatpush3.bf16.xpose.msra.mxu0 %v76_v8  ;;  %v303_v14 = vcombine.high %v45_v11, %v45_v11  ;;  %v46_v39 = vpack.c.bf16 %v45_v11, %v44_v10  ;;  %s508_s2 = smov [#allocation7]  }
  0x21   :  { %411 = vmatprep.subr.bf16.mxu0 %v505_v1  ;;  %s389_s26 = sshll.u32 %s508_s2, 4  ;;  %s390_s26 = int_to_ptr.vmem [resolvable:$true] %s389_s26 }
  0x22   :  { %v537_v7 = vsub.s32 %v124_v4, %v126_v5  ;;  %s473_s27 = scalar_lea.vmem %s390_s26, 512  ;;  %p478_p11 = scmp.lt.s32.totalorder %s390_s26, %s390_s26 }
  0x23   :  { %p474_p10 = scmp.ne.s32.totalorder %s390_s26, %s473_s27  ;;  %p479_p12 = scmp.lt.s32.totalorder %s473_s27, %s473_s27 }
  0x24   :  { %v261_v13 = vrot.slane %v44_v10, %v537_v7  ;;  %v310_v15 = vrot.slane %v45_v11, %v537_v7  ;;  %v268_v16 = vrot.slane %v254_v12, %v537_v7  ;;  %v317_v20 = vrot.slane %v303_v14, %v537_v7 }
  0x25   :  { %p480_p13 = por %p479_p12, %p478_p11 }
  0x26   :  { %v269_v17 = vcombine.high %v261_v13, %v261_v13  ;;  %v277_v18 = vrot.slane %v261_v13, %v537_v7  ;;  %v318_v21 = vcombine.high %v310_v15, %v310_v15  ;;  %v326_v22 = vrot.slane %v310_v15, %v537_v7 }
  0x27   :  { %v270_v23 = vcombine.high %v268_v16, %v268_v16  ;;  %v284_v24 = vrot.slane %v268_v16, %v537_v7  ;;  %v319_v27 = vcombine.high %v317_v20, %v317_v20  ;;  %v333_v28 = vrot.slane %v317_v20, %v537_v7  ;;  %p481_p0 = pnand %p480_p13, %p474_p10 }
  0x28   :  { %v291_v25 = vrot.slane %v269_v17, %v537_v7  ;;  %v299_v26 = vcombine.high %v277_v18, %v277_v18  ;;  %368 = vst.msk [vmem:[#allocation7 + $0x1] sm:$0x1] %vm235_vm2, %v277_v18  ;;  %v340_v29 = vrot.slane %v318_v21, %v537_v7  ;;  %v348_v30 = vcombine.high %v326_v22, %v326_v22 }
  0x29   :  { %376 = vst.msk [vmem:[#allocation7 + $0x11] sm:$0x1] %vm235_vm2, %v326_v22  ;;  %v298_v31 = vrot.slane %v270_v23, %v537_v7  ;;  %v300_v32 = vcombine.high %v284_v24, %v284_v24  ;;  %372 = vst.msk [vmem:[#allocation7 + $0x9] sm:$0x1] %vm235_vm2, %v284_v24  ;;  %v347_v34 = vrot.slane %v319_v27, %v537_v7  ;;  %412 = vmatpush3.bf16.xpose.msra.mxu0 %v73_v19 }
  0x2a   :  { %v301_v33 = vcombine.high %v291_v25, %v291_v25  ;;  %369 = vst.msk [vmem:[#allocation7 + $0x3] sm:$0x1] %vm235_vm2, %v291_v25  ;;  %370 = vst.msk [vmem:[#allocation7 + $0x5] sm:$0x1] %vm235_vm2, %v299_v26  ;;  %v349_v35 = vcombine.high %v333_v28, %v333_v28  ;;  %v350_v36 = vcombine.high %v340_v29, %v340_v29 }
  0x2b   :  { %377 = vst.msk [vmem:[#allocation7 + $0x13] sm:$0x1] %vm235_vm2, %v340_v29  ;;  %378 = vst.msk [vmem:[#allocation7 + $0x15] sm:$0x1] %vm235_vm2, %v348_v30  ;;  %v302_v37 = vcombine.high %v298_v31, %v298_v31  ;;  %v351_v38 = vcombine.high %v347_v34, %v347_v34 }
  0x2c   :  { %380 = vst.msk [vmem:[#allocation7 + $0x19] sm:$0x1] %vm235_vm2, %v333_v28  ;;  %371 = vst.msk [vmem:[#allocation7 + $0x7] sm:$0x1] %vm235_vm2, %v301_v33 }
  0x2d   :  { %373 = vst.msk [vmem:[#allocation7 + $0xb] sm:$0x1] %vm235_vm2, %v298_v31  ;;  %374 = vst.msk [vmem:[#allocation7 + $0xd] sm:$0x1] %vm235_vm2, %v300_v32 }
  0x2e   :  { %379 = vst.msk [vmem:[#allocation7 + $0x17] sm:$0x1] %vm235_vm2, %v350_v36  ;;  %381 = vst.msk [vmem:[#allocation7 + $0x1b] sm:$0x1] %vm235_vm2, %v347_v34 }
  0x2f   :  { %382 = vst.msk [vmem:[#allocation7 + $0x1d] sm:$0x1] %vm235_vm2, %v349_v35  ;;  %375 = vst.msk [vmem:[#allocation7 + $0xf] sm:$0x1] %vm235_vm2, %v302_v37 }
  0x30   :  { %383 = vst.msk [vmem:[#allocation7 + $0x1f] sm:$0x1] %vm235_vm2, %v351_v38  ;;  %414 = vmatmul.mubr.msk.bf16.vlgmr.msra.gmra.mxu0 %vm68_vm1, %v46_v39 }
  0xf0   :  { %v112_v41 = vpop.f32.mrf.mxu0 }
  0xf1   :  { %v113_v42 = vadd.f32 %v402_v40, %v112_v41 }
  0xf2   :  { %v415_v43 = vpop.f32.mrf.mxu0 }
  0xf3   :  { %v121_v44 = vcombine.high %v113_v42, %v113_v42  ;;  %v128_v45 = vrot.slane %v113_v42, %v537_v7 }
  0xf4   :  { %v115_v46 = vpop.f32.mrf.mxu0 }
  0xf5   :  { %v135_v47 = vrot.slane %v121_v44, %v537_v7  ;;  %v136_v48 = vcombine.high %v128_v45, %v128_v45  ;;  %v144_v49 = vrot.slane %v128_v45, %v537_v7  ;;  %v116_v50 = vadd.f32 %v402_v40, %v115_v46 }
  0xf6   :  { %v416_v51 = vpop.f32.mrf.mxu0 }
  0xf7   :  { %v137_v52 = vcombine.high %v135_v47, %v135_v47  ;;  %v151_v53 = vrot.slane %v135_v47, %v537_v7  ;;  %v158_v54 = vrot.slane %v136_v48, %v537_v7  ;;  %v166_v55 = vcombine.high %v144_v49, %v144_v49  ;;  %236 = vst.msk [vmem:[#allocation7] sm:$0x1] %vm235_vm2, %v144_v49 }
  0xf8   :  { %v170_v56 = vcombine.high %v116_v50, %v116_v50  ;;  %v177_v57 = vrot.slane %v116_v50, %v537_v7 }
  0xf9   :  { %v165_v58 = vrot.slane %v137_v52, %v537_v7  ;;  %v167_v59 = vcombine.high %v151_v53, %v151_v53  ;;  %v168_v60 = vcombine.high %v158_v54, %v158_v54  ;;  %237 = vst.msk [vmem:[#allocation7 + $0x2] sm:$0x1] %vm235_vm2, %v158_v54  ;;  %238 = vst.msk [vmem:[#allocation7 + $0x4] sm:$0x1] %vm235_vm2, %v166_v55 }
  0xfa   :  { %240 = vst.msk [vmem:[#allocation7 + $0x8] sm:$0x1] %vm235_vm2, %v151_v53  ;;  %v184_v61 = vrot.slane %v170_v56, %v537_v7  ;;  %v185_v62 = vcombine.high %v177_v57, %v177_v57  ;;  %v193_v63 = vrot.slane %v177_v57, %v537_v7 }
  0xfb   :  { %v169_v0 = vcombine.high %v165_v58, %v165_v58  ;;  %239 = vst.msk [vmem:[#allocation7 + $0x6] sm:$0x1] %vm235_vm2, %v168_v60  ;;  %241 = vst.msk [vmem:[#allocation7 + $0xa] sm:$0x1] %vm235_vm2, %v165_v58 }
  0xfc   :  { %242 = vst.msk [vmem:[#allocation7 + $0xc] sm:$0x1] %vm235_vm2, %v167_v59  ;;  %v186_v1 = vcombine.high %v184_v61, %v184_v61  ;;  %v200_v2 = vrot.slane %v184_v61, %v537_v7  ;;  %v207_v3 = vrot.slane %v185_v62, %v537_v7  ;;  %v215_v4 = vcombine.high %v193_v63, %v193_v63 }
  0xfd   :  { %244 = vst.msk [vmem:[#allocation7 + $0x10] sm:$0x1] %vm235_vm2, %v193_v63  ;;  %243 = vst.msk [vmem:[#allocation7 + $0xe] sm:$0x1] %vm235_vm2, %v169_v0 }
  0xfe   :  { %v214_v5 = vrot.slane %v186_v1, %v537_v7  ;;  %v216_v6 = vcombine.high %v200_v2, %v200_v2  ;;  %v217_v8 = vcombine.high %v207_v3, %v207_v3  ;;  %245 = vst.msk [vmem:[#allocation7 + $0x12] sm:$0x1] %vm235_vm2, %v207_v3  ;;  %246 = vst.msk [vmem:[#allocation7 + $0x14] sm:$0x1] %vm235_vm2, %v215_v4 }
  0xff   :  { %248 = vst.msk [vmem:[#allocation7 + $0x18] sm:$0x1] %vm235_vm2, %v200_v2 }
 0x100   :  { %v218_v9 = vcombine.high %v214_v5, %v214_v5  ;;  %247 = vst.msk [vmem:[#allocation7 + $0x16] sm:$0x1] %vm235_vm2, %v217_v8  ;;  %249 = vst.msk [vmem:[#allocation7 + $0x1a] sm:$0x1] %vm235_vm2, %v214_v5 }
 0x101   :  { %250 = vst.msk [vmem:[#allocation7 + $0x1c] sm:$0x1] %vm235_vm2, %v216_v6 }
 0x102   :  { %251 = vst.msk [vmem:[#allocation7 + $0x1e] sm:$0x1] %vm235_vm2, %v218_v9 }
 0x103   :  { %484 = shalt.err (!%p481_p0)
}
 0x104   :  { %s509_s28 = smov 32   ;;  %s510_s29 = smov 2  }
 0x105   :  { %395 = dma.vmem_to_hbm [thread:$0]  %s390_s26, 512, %s607_s3, [#allocation4], %s509_s28, %s509_s28, %s510_s29  }
 0x106   :  { %497 = dma.done.wait [#allocation4], 512  }
 0x107   :  { %498 = vsyncadd [#allocation4], 4294966784 }
 0x108   :  { %399 = vsyncpa [#allocation3], 1 }
 0x109   :  { %400 = vsyncpa [#allocation6], 1 }
 0x10a   :  { %401 = vsyncpa [#allocation4], 1 }

</bundles_post_ra>
